<compile_context>
chip_gen: v5e
topology: v5e:2x2
jax: 0.10.0
libtpu: 0.0.40
codegen_flags: <defaults>
</compile_context>

<pallas_src>
import jax
import jax.numpy as jnp
from jax.experimental import pallas as pl
from jax.experimental.pallas import tpu as pltpu


# ----------------------------------------------------------------------------
# Pallas kernels
# ----------------------------------------------------------------------------

def _proj_kernel(w_ref, v_ref, vt_ref, o_ref):
    # compute_topk (init-only): W_proj = (W @ V) @ V^T
    wv = jnp.dot(w_ref[...], v_ref[...], preferred_element_type=jnp.float32)
    o_ref[...] = jnp.dot(wv, vt_ref[...], preferred_element_type=jnp.float32)


def _fused_forward_kernel(x_ref, cw_ref, cb_ref, hw_ref, hb_ref, o_ref):
    """Fused conv3x3(SAME) + ReLU + global-avg-pool + projected linear head.

    x_ref : (B, H+2, W+2, Cin) f32   zero-padded NHWC input
    cw_ref: (9, Cin, Fp)       bf16  conv weight, tap-major (kh*3+kw), F zero-padded
    cb_ref: (1, Fp)            f32   conv bias (zero-padded)
    hw_ref: (Fp, NCp)          bf16  projected linear weight^T (zero-padded)
    hb_ref: (1, NCp)           f32   linear bias (zero-padded)
    o_ref : (B, NCp)           f32   logits (lane-dense; sliced to NC outside)
    """
    B, Hp, Wp, Cin = x_ref.shape
    H, W = Hp - 2, Wp - 2
    HW = H * W
    M = B * HW
    Fp = cw_ref.shape[2]

    xv = x_ref[...]  # whole (tiny) padded input lives in vregs / VMEM

    # --- conv as 9 accumulated shifted-tap matmuls (im2col never hits HBM) ---
    acc = jnp.zeros((M, Fp), jnp.float32)
    for idx in range(9):                      # static unroll over the 3x3 taps
        kh, kw = idx // 3, idx % 3
        tap = xv[:, kh:kh + H, kw:kw + W, :].reshape(M, Cin)      # f32 (M, Cin)
        acc = acc + jnp.dot(tap.astype(jnp.bfloat16), cw_ref[idx],
                            preferred_element_type=jnp.float32)
    feats = jnp.maximum(acc + cb_ref[...], 0.0)                   # (M, Fp) f32

    # --- global average pool per image, on the MXU (no XLU sublane reduce) ---
    rows = jax.lax.broadcasted_iota(jnp.int32, (B, M), 0)
    cols = jax.lax.broadcasted_iota(jnp.int32, (B, M), 1)
    in_img = (cols >= rows * HW) & (cols < (rows + 1) * HW)
    pool = jnp.where(in_img, 1.0 / HW, 0.0).astype(jnp.bfloat16)  # (B, M)
    pooled = jnp.dot(pool, feats.astype(jnp.bfloat16),
                     preferred_element_type=jnp.float32)          # (B, Fp) f32

    # --- projected linear head (self.linear with W @ V @ V^T weight) ---------
    logits = jnp.dot(pooled.astype(jnp.bfloat16), hw_ref[...],
                     preferred_element_type=jnp.float32) + hb_ref[...]
    o_ref[...] = logits                                           # (B, NCp)


# ----------------------------------------------------------------------------
# Wrappers (glue)
# ----------------------------------------------------------------------------

def project_weight(w, v):
    """compute_topk: W @ V @ V^T   (W: (NC, F), V: (F, k)). Init-only."""
    NC, F = w.shape
    k = v.shape[1]
    vt = v.T  # precomputed once; avoids an in-kernel XLU transpose
    return pl.pallas_call(
        _proj_kernel,
        out_shape=jax.ShapeDtypeStruct((NC, F), jnp.float32),
        grid=(1,),
        in_specs=[
            pl.BlockSpec((NC, F), lambda i: (0, 0)),
            pl.BlockSpec((F, k), lambda i: (0, 0)),
            pl.BlockSpec((k, F), lambda i: (0, 0)),
        ],
        out_specs=pl.BlockSpec((NC, F), lambda i: (0, 0)),
    )(w, v, vt)


def prepare_params(conv_w, conv_b, lin_w_proj, lin_b, f_pad=128, nc_pad=128):
    """One-time parameter prep (hoisted out of the forward hot path).

    Returns lane-dense, zero-padded, MXU-ready parameter tensors:
      cw: (9, Cin, f_pad) bf16   per-tap conv weights, tap index = kh*3 + kw
      cb: (1, f_pad)      f32    conv bias
      hw: (f_pad, nc_pad) bf16   projected linear weight^T
      hb: (1, nc_pad)     f32    linear bias
    """
    F, Cin = conv_w.shape[0], conv_w.shape[1]
    NC = lin_w_proj.shape[0]
    cw = conv_w.transpose(2, 3, 1, 0).reshape(9, Cin, F)      # (kh*kw, cin, F)
    cw = jnp.pad(cw, ((0, 0), (0, 0), (0, f_pad - F))).astype(jnp.bfloat16)
    cb = jnp.pad(conv_b.reshape(1, F), ((0, 0), (0, f_pad - F))).astype(jnp.float32)
    hw = jnp.pad(lin_w_proj.T, ((0, f_pad - F), (0, nc_pad - NC))).astype(jnp.bfloat16)
    hb = jnp.pad(lin_b.reshape(1, NC), ((0, 0), (0, nc_pad - NC))).astype(jnp.float32)
    return cw, cb, hw, hb


def our_model_forward(x, cw, cb, hw, hb, num_classes):
    """x: (B, Cin, H, W) NCHW -> logits (B, num_classes). Single fused kernel."""
    B, Cin, H, W = x.shape
    Fp = cw.shape[2]
    NCp = hw.shape[1]

    # NCHW -> padded NHWC (input-sized layout transform only; no 9x patch tensor).
    xpad = jnp.pad(jnp.transpose(x, (0, 2, 3, 1)),
                   ((0, 0), (1, 1), (1, 1), (0, 0)))

    logits_p = pl.pallas_call(
        _fused_forward_kernel,
        out_shape=jax.ShapeDtypeStruct((B, NCp), jnp.float32),
        grid=(1,),
        in_specs=[
            pl.BlockSpec((B, H + 2, W + 2, Cin), lambda i: (0, 0, 0, 0)),
            pl.BlockSpec((9, Cin, Fp), lambda i: (0, 0, 0)),
            pl.BlockSpec((1, Fp), lambda i: (0, 0)),
            pl.BlockSpec((Fp, NCp), lambda i: (0, 0)),
            pl.BlockSpec((1, NCp), lambda i: (0, 0)),
        ],
        out_specs=pl.BlockSpec((B, NCp), lambda i: (0, 0)),
        compiler_params=pltpu.CompilerParams(
            dimension_semantics=("arbitrary",)),
    )(xpad, cw, cb, hw, hb)

    return logits_p[:, :num_classes]


# ----------------------------------------------------------------------------
# Main
# ----------------------------------------------------------------------------

if __name__ == "__main__":
    # Small shapes consistent with a CIFAR-style model.
    B, Cin, H, W = 2, 3, 16, 16      # input images (NCHW)
    F = 32                            # backbone feature dim
    NC = 10                           # num classes
    K_TOP = 8                         # top-k eigenvectors (module uses 100 at full scale)

    key = jax.random.PRNGKey(0)
    k_x, k_cw, k_cb, k_lw, k_lb, k_ev = jax.random.split(key, 6)

    x = jax.random.normal(k_x, (B, Cin, H, W), dtype=jnp.float32)

    # Deterministic parameters (synthetic; shapes follow the module contract).
    conv_w = jax.random.normal(k_cw, (F, Cin, 3, 3), dtype=jnp.float32) * 0.1
    conv_b = jax.random.normal(k_cb, (F,), dtype=jnp.float32) * 0.1
    lin_w = jax.random.normal(k_lw, (NC, F), dtype=jnp.float32) * 0.1
    lin_b = jax.random.normal(k_lb, (NC,), dtype=jnp.float32) * 0.1

    # Eigenvectors: orthonormal columns (eigenvalues unused by compute_topk).
    eigvecs, _ = jnp.linalg.qr(jax.random.normal(k_ev, (F, F), dtype=jnp.float32))
    v_topk = eigvecs[:, :K_TOP]                          # (F, K_TOP)

    # __init__ / compute_topk: project the linear weight (init-only Pallas kernel).
    lin_w_proj = project_weight(lin_w, v_topk)           # (NC, F)

    # One-time parameter prep (reshape / transpose / pad / bf16 cast), hoisted.
    cw, cb, hw, hb = prepare_params(conv_w, conv_b, lin_w_proj, lin_b)

    # forward (single fused Pallas kernel)
    fwd = jax.jit(lambda xx: our_model_forward(xx, cw, cb, hw, hb, NC))
    logits = fwd(x)
    jax.block_until_ready(logits)

    assert logits.shape == (B, NC) and logits.dtype == jnp.float32
    assert bool(jnp.all(jnp.isfinite(logits)))
    print("KERNEL_OK")
</pallas_src>

<mosaic_0001>
module attributes {stable_mosaic.version = 11 : i64} {
  func.func @_proj_kernel(%arg0: i32, %arg1: memref<10x32xf32, #tpu.memory_space<vmem>>, %arg2: memref<32x8xf32, #tpu.memory_space<vmem>>, %arg3: memref<8x32xf32, #tpu.memory_space<vmem>>, %arg4: memref<10x32xf32, #tpu.memory_space<vmem>>) attributes {dimension_semantics = [#tpu.dimension_semantics<arbitrary>], iteration_bounds = array<i64: 1>, scalar_prefetch = 0 : i64, scratch_operands = 0 : i64, tpu.core_type = #tpu.core_type<tc>, window_params = [{pipeline_mode = #tpu.pipeline_mode<synchronous>, transform_indices = @transform_0, window_bounds = array<i64: 10, 32>}, {pipeline_mode = #tpu.pipeline_mode<synchronous>, transform_indices = @transform_1, window_bounds = array<i64: 32, 8>}, {pipeline_mode = #tpu.pipeline_mode<synchronous>, transform_indices = @transform_2, window_bounds = array<i64: 8, 32>}, {pipeline_mode = #tpu.pipeline_mode<synchronous>, transform_indices = @transform_3, window_bounds = array<i64: 10, 32>}]} {
    %c0 = arith.constant 0 : index
    %c0_0 = arith.constant 0 : index
    %0 = vector.load %arg1[%c0, %c0_0] : memref<10x32xf32, #tpu.memory_space<vmem>>, vector<10x32xf32>
    %c0_1 = arith.constant 0 : index
    %c0_2 = arith.constant 0 : index
    %1 = vector.load %arg2[%c0_1, %c0_2] : memref<32x8xf32, #tpu.memory_space<vmem>>, vector<32x8xf32>
    %cst = arith.constant dense<0.000000e+00> : vector<10x8xf32>
    %2 = tpu.matmul %0, %1, %cst {dimension_numbers = #tpu.dot_dimension_numbers<[1], [0], [0], [1], [0, 0, 1, 1], [], []>} : vector<10x32xf32>, vector<32x8xf32>, vector<10x8xf32> -> vector<10x8xf32>
    %c0_3 = arith.constant 0 : index
    %c0_4 = arith.constant 0 : index
    %3 = vector.load %arg3[%c0_3, %c0_4] : memref<8x32xf32, #tpu.memory_space<vmem>>, vector<8x32xf32>
    %cst_5 = arith.constant dense<0.000000e+00> : vector<10x32xf32>
    %4 = tpu.matmul %2, %3, %cst_5 {dimension_numbers = #tpu.dot_dimension_numbers<[1], [0], [0], [1], [0, 0, 1, 1], [], []>} : vector<10x8xf32>, vector<8x32xf32>, vector<10x32xf32> -> vector<10x32xf32>
    %c0_6 = arith.constant 0 : index
    %c0_7 = arith.constant 0 : index
    %5 = vector.load %arg4[%c0_6, %c0_7] : memref<10x32xf32, #tpu.memory_space<vmem>>, vector<10x32xf32>
    tpu.vector_store %arg4[%c0_6, %c0_7], %4 {strides = array<i32>} : memref<10x32xf32, #tpu.memory_space<vmem>>, vector<10x32xf32>,
    return
  }
  func.func @transform_0(%arg0: i32) -> (i32, i32) {
    %c0_i32 = arith.constant 0 : i32
    %c0_i32_0 = arith.constant 0 : i32
    %c0_i32_1 = arith.constant 0 : i32
    return %c0_i32, %c0_i32_0 : i32, i32
  }
  func.func @transform_1(%arg0: i32) -> (i32, i32) {
    %c0_i32 = arith.constant 0 : i32
    %c0_i32_0 = arith.constant 0 : i32
    %c0_i32_1 = arith.constant 0 : i32
    return %c0_i32, %c0_i32_0 : i32, i32
  }
  func.func @transform_2(%arg0: i32) -> (i32, i32) {
    %c0_i32 = arith.constant 0 : i32
    %c0_i32_0 = arith.constant 0 : i32
    %c0_i32_1 = arith.constant 0 : i32
    return %c0_i32, %c0_i32_0 : i32, i32
  }
  func.func @transform_3(%arg0: i32) -> (i32, i32) {
    %c0_i32 = arith.constant 0 : i32
    %c0_i32_0 = arith.constant 0 : i32
    %c0_i32_1 = arith.constant 0 : i32
    return %c0_i32, %c0_i32_0 : i32, i32
  }
}

</mosaic_0001>

<bundles_post_ra>
// kernel: tpu_custom_call.1
= control target key start
LH: loop header
LB: loop body
LE: loop exit
PB: predicated region body
PF: predicated region fallthrough
CT: control target
= control target key end

     0   :  { %s191_s0 = inlined_call_operand.vmem [shape: f32[10,32], index: 0, kind: input, shape index: {}]   ;;  %s192_s1 = inlined_call_operand.vmem [shape: f32[32,8], index: 1, kind: input, shape index: {}]   ;;  %s193_s2 = inlined_call_operand.vmem [shape: f32[8,32], index: 2, kind: input, shape index: {}]   ;;  %s194_s3 = inlined_call_operand.hbm [shape: f32[10,32], index: 3, kind: output, shape index: {}]  }
   0x1   :  { %v20_v0 = vld [vmem:[%s192_s1 + $0x18] sm:$0xff]  ;;  %v19_v1 = vld [vmem:[%s192_s1 + $0x10] sm:$0xff]  ;;  %v18_v2 = vld [vmem:[%s192_s1 + $0x8] sm:$0xff] }
   0x2   :  { %107 = vmatpush.msra.mxu2 %v20_v0  ;;  %40 = vmatpush.msra.mxu0 %v20_v0 }
   0x3   :  { %8 = vsyncpa [#allocation3], 0  ;;  %v17_v3 = vld [vmem:[%s192_s1] sm:$0xff]  ;;  %v16_v4 = vld [vmem:[%s191_s0 + $0x8] sm:$0x3]  ;;  %vm21_vm0 = vcmask 261120  }
   0x4   :  { %108 = vmatpush.msra.mxu2 %v19_v1  ;;  %41 = vmatpush.msra.mxu0 %v19_v1  ;;  %v15_v5 = vld [vmem:[%s191_s0] sm:$0xff]  ;;  %vm52_vm1 = vcmask 64512   ;;  %s141_s0 = smov [#allocation2]   ;;  %s91_s28 = sshll.u32 %s194_s3, 4  ;;  %vm83_vm2 = vcmask 254976   ;;  %s92_s28 = int_to_ptr.hbm [resolvable:$true] %s91_s28 }
   0x5   :  { %v51_v6 = vld [vmem:[%s193_s2] sm:$0xff]  ;;  %s89_s1 = sshll.u32 %s141_s0, 4  ;;  %s142_s2 = smov 128   ;;  %s90_s1 = int_to_ptr.vmem [resolvable:$true] %s89_s1 }
   0x6   :  { %109 = vmatpush.msra.mxu2 %v18_v2  ;;  %42 = vmatpush.msra.mxu0 %v18_v2  ;;  %s143_s29 = smov 8  }
   0x7   :  { %111 = vmatpush.msra.mxu3 %v51_v6  ;;  %74 = vmatpush.msra.mxu1 %v51_v6 }
   0x8   :  { %110 = vmatpush.msra.mxu2 %v17_v3  ;;  %43 = vmatpush.msra.mxu0 %v17_v3 }
   0x9   :  { %104 = vmatmul.msk.f32.vlgmr.msra.gmra.mxu2 %vm21_vm0, %v16_v4  ;;  %103 = vmatmul.msk.f32.vlgmr.msra.gmra.mxu0 %vm21_vm0, %v15_v5 }
  0x86   :  { %v45_v7 = vpop.f32.mrf.mxu0 }
  0x87   :  { %105 = vmatmul.msk.f32.vlgmr.msra.gmra.mxu1 %vm52_vm1, %v45_v7 }
  0x8c   :  { %v48_v8 = vpop.f32.mrf.mxu2 }
  0x8d   :  { %106 = vmatmul.msk.f32.vlgmr.msra.gmra.mxu3 %vm52_vm1, %v48_v8 }
 0x104   :  { %v76_v9 = vpop.f32.mrf.mxu1 }
 0x105   :  { %82 = vst.msk [vmem:[#allocation2] sm:$0xff] %vm21_vm0, %v76_v9 }
 0x110   :  { %v79_v10 = vpop.f32.mrf.mxu3 }
 0x111   :  { %84 = vst.msk [vmem:[#allocation2 + $0x8] sm:$0x3] %vm83_vm2, %v79_v10 }
 0x112   :  { %97 = dma.vmem_to_hbm [thread:$0]  %s90_s1, 256, %s92_s28, [#allocation3], %s142_s2, %s142_s2, %s143_s29  }
 0x113   :  { %139 = dma.done.wait [#allocation3], 256  }
 0x114   :  { %140 = vsyncadd [#allocation3], 4294967040 }
 0x115   :  { %102 = vsyncpa [#allocation3], 1 }

</bundles_post_ra>
